<compile_context>
chip_gen: v6e
topology: v6e:2x2x1
jax: 0.10.0
libtpu: 0.0.40
codegen_flags: <defaults>
</compile_context>

<pallas_src>
import math
from enum import Enum

import jax
import jax.numpy as jnp
from jax.experimental import pallas as pl
from jax.experimental.pallas import tpu as pltpu


class Format(str, Enum):
    NCHW = "NCHW"
    NHWC = "NHWC"
    NCL = "NCL"
    NLC = "NLC"


def _to_2tuple(x):
    if isinstance(x, (tuple, list)):
        return tuple(x)
    return (x, x)


def _round_up(x, m):
    return ((x + m - 1) // m) * m


def _choose_tm(m8, cap):
    """Pick an M tile: as big as the budget allows, without gross padding waste."""
    cap = max(128, (cap // 8) * 8)
    if m8 <= cap:
        return m8  # single M tile, zero padding waste
    candidates = [c for c in (512, 384, 256, 128) if c <= cap]
    if not candidates:
        candidates = [128]
    # Prefer the largest tile whose M zero-padding waste is <= 1/16 of M.
    for c in candidates:
        if (_round_up(m8, c) - m8) * 16 <= m8:
            return c
    # Otherwise minimize waste (tie-break towards the larger tile).
    return min(candidates, key=lambda c: (_round_up(m8, c) - m8, -c))


def _patch_proj_kernel(x_ref, w_ref, b_ref, o_ref):
    """One (tm, N_pad) output tile: patches @ W (single-shot K) + bias."""
    acc = jnp.dot(x_ref[...], w_ref[...], preferred_element_type=jnp.float32)
    o_ref[...] = (acc + b_ref[...]).astype(o_ref.dtype)


def _patch_proj(patches, w_pad, b_pad, *, out_dtype):
    """patches: (M, K) bf16, w_pad: (K_pad, N_pad) bf16, b_pad: (1, N_pad) f32."""
    m, k = patches.shape
    k_pad, n_pad = w_pad.shape
    out_itemsize = jnp.dtype(out_dtype).itemsize

    # VMEM plan: resident W + bias, double-buffered x tiles and output tiles.
    resident_bytes = k_pad * n_pad * 2 + 8 * n_pad * 4
    per_row_bytes = 2 * k_pad * 2 + 2 * n_pad * out_itemsize
    budget = 28 << 20  # headroom vs. v7x's 32 MiB scoped-VMEM default
    # TODO(synk): if a (pathologically large) config ever exceeds this budget,
    # fall back to a K-tiled accumulator variant; real ViT configs never do.
    cap = max(128, min(512, (budget - resident_bytes) // max(per_row_bytes, 1)))

    m8 = _round_up(max(m, 8), 8)
    tm = _choose_tm(m8, cap)
    m_pad = _round_up(m8, tm)

    if (m_pad, k_pad) != (m, k):
        patches = jnp.pad(patches, ((0, m_pad - m), (0, k_pad - k)))

    plan_bytes = resident_bytes + tm * per_row_bytes
    vmem_limit = int(min(max(2 * plan_bytes + (1 << 20), 16 << 20), 64 << 20))

    grid = (m_pad // tm,)

    out = pl.pallas_call(
        _patch_proj_kernel,
        out_shape=jax.ShapeDtypeStruct((m_pad, n_pad), out_dtype),
        grid_spec=pltpu.PrefetchScalarGridSpec(
            num_scalar_prefetch=0,
            grid=grid,
            in_specs=[
                pl.BlockSpec((tm, k_pad), lambda i: (i, 0)),
                # Grid-constant index maps: W / bias stay VMEM-resident
                # (DMA'd once per core), not re-fetched per M tile.
                pl.BlockSpec((k_pad, n_pad), lambda i: (0, 0)),
                pl.BlockSpec((1, n_pad), lambda i: (0, 0)),
            ],
            out_specs=pl.BlockSpec((tm, n_pad), lambda i: (i, 0)),
        ),
        compiler_params=pltpu.CompilerParams(
            dimension_semantics=("parallel",),
            vmem_limit_bytes=vmem_limit,
        ),
    )(patches, w_pad, b_pad)

    return out[:m, :]


class PatchEmbed:
    """JAX/Pallas port of timm's PatchEmbed (Conv2d patchify projection)."""

    def __init__(self, img_size=224, patch_size=16, in_chans=3, embed_dim=768,
                 norm_layer=None, flatten=True, output_fmt=None, bias=True,
                 strict_img_size=True, dynamic_img_pad=False, *, key,
                 dtype=jnp.float32):
        self.patch_size = _to_2tuple(patch_size)
        self.img_size, self.grid_size, self.num_patches = self._init_img_size(img_size)
        if output_fmt is not None:
            self.flatten = False
            self.output_fmt = Format(output_fmt)
        else:
            self.flatten = flatten
            self.output_fmt = Format.NCHW
        self.strict_img_size = strict_img_size
        self.dynamic_img_pad = dynamic_img_pad
        self.in_chans = in_chans
        self.embed_dim = embed_dim
        self.dtype = dtype
        if norm_layer is not None:
            # TODO(synk): only the default Identity norm is supported; a fused
            # LayerNorm epilogue could be added inside the kernel.
            raise NotImplementedError("norm_layer is not supported")

        ph, pw = self.patch_size
        fan_in = in_chans * ph * pw
        bound = 1.0 / math.sqrt(fan_in)
        k_w, k_b = jax.random.split(key)
        # PyTorch Conv2d default init ~ U(-1/sqrt(fan_in), 1/sqrt(fan_in)).
        self.proj_weight = jax.random.uniform(
            k_w, (embed_dim, in_chans, ph, pw), dtype=jnp.float32,
            minval=-bound, maxval=bound)
        if bias:
            self.proj_bias = jax.random.uniform(
                k_b, (embed_dim,), dtype=jnp.float32, minval=-bound, maxval=bound)
        else:
            self.proj_bias = jnp.zeros((embed_dim,), jnp.float32)

        # Pre-pack projection ONCE: (K_pad, N_pad) bf16 GEMM operand with K
        # ordered (C, ph, pw) to match the patchify below, plus a (1, N_pad)
        # f32 bias row.  Both are 128-lane aligned (unmasked lane-dense stores)
        # and never re-padded per call.
        self._k_dim = fan_in
        self._k_pad = _round_up(fan_in, 128)
        self._n_pad = _round_up(embed_dim, 128)
        w_flat = self.proj_weight.reshape(embed_dim, fan_in).T  # (K, N)
        self._w_pad = (
            jnp.zeros((self._k_pad, self._n_pad), jnp.bfloat16)
            .at[:fan_in, :embed_dim].set(w_flat.astype(jnp.bfloat16)))
        self._b_pad = (
            jnp.zeros((1, self._n_pad), jnp.float32)
            .at[0, :embed_dim].set(self.proj_bias))

    def _init_img_size(self, img_size):
        if img_size is None:
            return None, None, None
        img_size = _to_2tuple(img_size)
        grid_size = tuple(s // p for s, p in zip(img_size, self.patch_size))
        return img_size, grid_size, grid_size[0] * grid_size[1]

    def __call__(self, x):
        B, C, H, W = x.shape
        ph, pw = self.patch_size
        if self.img_size is not None:
            if self.strict_img_size:
                assert H == self.img_size[0], f"height {H} != {self.img_size[0]}"
                assert W == self.img_size[1], f"width {W} != {self.img_size[1]}"
            elif not self.dynamic_img_pad:
                assert H % ph == 0 and W % pw == 0

        # Work in bf16 from the start: halves the (memory-bound) patchify
        # transpose and the GEMM's activation DMA traffic.
        x = x.astype(jnp.bfloat16)
        if self.dynamic_img_pad:
            pad_h = (ph - H % ph) % ph
            pad_w = (pw - W % pw) % pw
            x = jnp.pad(x, ((0, 0), (0, 0), (0, pad_h), (0, pad_w)))
            H += pad_h
            W += pad_w

        gh, gw = H // ph, W // pw
        L = gh * gw
        K = C * ph * pw

        # Patchify (layout plumbing outside the kernel): (B*L, C*ph*pw) bf16,
        # K ordered (C, ph, pw) to match the pre-packed weight.
        patches = (
            x.reshape(B, C, gh, ph, gw, pw)
            .transpose(0, 2, 4, 1, 3, 5)
            .reshape(B * L, K))

        out = _patch_proj(patches, self._w_pad, self._b_pad, out_dtype=self.dtype)
        out = out[:, : self.embed_dim]            # (B*L, D)

        if self.flatten:                          # NLC
            return out.reshape(B, L, self.embed_dim)
        if self.output_fmt == Format.NHWC:
            return out.reshape(B, gh, gw, self.embed_dim)
        if self.output_fmt == Format.NLC:
            return out.reshape(B, L, self.embed_dim)
        if self.output_fmt == Format.NCL:
            return out.reshape(B, L, self.embed_dim).transpose(0, 2, 1)
        # NCHW
        return out.reshape(B, gh, gw, self.embed_dim).transpose(0, 3, 1, 2)


if __name__ == "__main__":
    key = jax.random.PRNGKey(0)
    k_param, k_x = jax.random.split(key)

    B, C, HW, P, D = 2, 4, 16, 4, 32
    embed = PatchEmbed(img_size=HW, patch_size=P, in_chans=C, embed_dim=D,
                       flatten=True, bias=True, key=k_param)

    x = jax.random.normal(k_x, (B, C, HW, HW), dtype=jnp.float32)
    # Quantize inputs/weights to bf16-representable values so the bf16 MXU
    # path and the f32 reference conv agree to tight tolerances.
    x = x.astype(jnp.bfloat16).astype(jnp.float32)
    embed.proj_weight = embed.proj_weight.astype(jnp.bfloat16).astype(jnp.float32)

    out = embed(x)
    out = jax.block_until_ready(out)

    # Reference: true strided conv (Conv2d kernel=stride=patch), then flatten.
    ref = jax.lax.conv_general_dilated(
        x, embed.proj_weight, window_strides=(P, P), padding="VALID",
        dimension_numbers=("NCHW", "OIHW", "NCHW"))
    ref = ref + embed.proj_bias.reshape(1, D, 1, 1)
    ref = ref.reshape(B, D, -1).transpose(0, 2, 1)   # (B, L, D)

    L = (HW // P) * (HW // P)
    assert out.shape == (B, L, D), out.shape
    assert jnp.allclose(out, ref, atol=1e-3, rtol=1e-3), float(
        jnp.max(jnp.abs(out - ref)))

    print("KERNEL_OK")
</pallas_src>

<mosaic_0001>
module attributes {stable_mosaic.version = 11 : i64} {
  func.func @_patch_proj_kernel(%arg0: i32, %arg1: memref<32x128xbf16, #tpu.memory_space<vmem>>, %arg2: memref<128x128xbf16, #tpu.memory_space<vmem>>, %arg3: memref<1x128xf32, #tpu.memory_space<vmem>>, %arg4: memref<32x128xf32, #tpu.memory_space<vmem>>) attributes {dimension_semantics = [#tpu.dimension_semantics<parallel>], iteration_bounds = array<i64: 1>, scalar_prefetch = 0 : i64, scratch_operands = 0 : i64, tpu.core_type = #tpu.core_type<tc>, window_params = [{transform_indices = @transform_0, window_bounds = array<i64: 32, 128>}, {pipeline_mode = #tpu.pipeline_mode<synchronous>, transform_indices = @transform_1, window_bounds = array<i64: 128, 128>}, {pipeline_mode = #tpu.pipeline_mode<synchronous>, transform_indices = @transform_2, window_bounds = array<i64: 1, 128>}, {transform_indices = @transform_3, window_bounds = array<i64: 32, 128>}]} {
    %c0 = arith.constant 0 : index
    %c0_0 = arith.constant 0 : index
    %0 = vector.load %arg1[%c0, %c0_0] : memref<32x128xbf16, #tpu.memory_space<vmem>>, vector<32x128xbf16>
    %c0_1 = arith.constant 0 : index
    %c0_2 = arith.constant 0 : index
    %1 = vector.load %arg2[%c0_1, %c0_2] : memref<128x128xbf16, #tpu.memory_space<vmem>>, vector<128x128xbf16>
    %cst = arith.constant dense<0.000000e+00> : vector<32x128xf32>
    %2 = tpu.matmul %0, %1, %cst {dimension_numbers = #tpu.dot_dimension_numbers<[1], [0], [0], [1], [0, 0, 1, 1], [], []>} : vector<32x128xbf16>, vector<128x128xbf16>, vector<32x128xf32> -> vector<32x128xf32>
    %c0_3 = arith.constant 0 : index
    %c0_4 = arith.constant 0 : index
    %3 = vector.load %arg3[%c0_3, %c0_4] : memref<1x128xf32, #tpu.memory_space<vmem>>, vector<1x128xf32>
    %4 = vector.broadcast %3 : vector<1x128xf32> to vector<32x128xf32>
    %5 = arith.addf %2, %4 : vector<32x128xf32>
    %c0_5 = arith.constant 0 : index
    %c0_6 = arith.constant 0 : index
    %6 = vector.load %arg4[%c0_5, %c0_6] : memref<32x128xf32, #tpu.memory_space<vmem>>, vector<32x128xf32>
    tpu.vector_store %arg4[%c0_5, %c0_6], %5 {strides = array<i32>} : memref<32x128xf32, #tpu.memory_space<vmem>>, vector<32x128xf32>,
    return
  }
  func.func @transform_0(%arg0: i32) -> (i32, i32) {
    %c0_i32 = arith.constant 0 : i32
    %c0_i32_0 = arith.constant 0 : i32
    return %arg0, %c0_i32 : i32, i32
  }
  func.func @transform_1(%arg0: i32) -> (i32, i32) {
    %c0_i32 = arith.constant 0 : i32
    %c0_i32_0 = arith.constant 0 : i32
    %c0_i32_1 = arith.constant 0 : i32
    return %c0_i32, %c0_i32_0 : i32, i32
  }
  func.func @transform_2(%arg0: i32) -> (i32, i32) {
    %c0_i32 = arith.constant 0 : i32
    %c0_i32_0 = arith.constant 0 : i32
    %c0_i32_1 = arith.constant 0 : i32
    return %c0_i32, %c0_i32_0 : i32, i32
  }
  func.func @transform_3(%arg0: i32) -> (i32, i32) {
    %c0_i32 = arith.constant 0 : i32
    %c0_i32_0 = arith.constant 0 : i32
    return %arg0, %c0_i32 : i32, i32
  }
}

</mosaic_0001>

<bundles_post_ra>
// kernel: tpu_custom_call.1
= control target key start
LH: loop header
LB: loop body
LE: loop exit
PB: predicated region body
PF: predicated region fallthrough
CT: control target
= control target key end

     0   :  { %8 = vsyncpa [#allocation3], 0  ;;  %s365_s0 = inlined_call_operand.hbm [shape: bf16[32,128], index: 0, kind: input, shape index: {}]   ;;  %s366_s1 = inlined_call_operand.hbm [shape: bf16[128,128], index: 1, kind: input, shape index: {}]   ;;  %s367_s2 = inlined_call_operand.vmem [shape: f32[1,128], index: 2, kind: input, shape index: {}]   ;;  %s368_s3 = inlined_call_operand.hbm [shape: f32[32,128], index: 3, kind: output, shape index: {}]  }
   0x1   :  { %9 = vsyncpa [#allocation6], 0 }
   0x2   :  { %10 = vsyncpa [#allocation4], 0  ;;  %s326_s12 = smov [#allocation2]  }
   0x3   :  { %s16_s13 = sshll.u32 %s326_s12, 4  ;;  %s17_s13 = int_to_ptr.vmem [resolvable:$true] %s16_s13 }
   0x4   :  { %s268_s14 = scalar_lea.vmem %s17_s13, 256  ;;  %p273_p1 = scmp.lt.s32.totalorder %s17_s13, %s17_s13 }
   0x5   :  { %p269_p0 = scmp.ne.s32.totalorder %s17_s13, %s268_s14  ;;  %p274_p2 = scmp.lt.s32.totalorder %s268_s14, %s268_s14 }
   0x7   :  { %p275_p3 = por %p274_p2, %p273_p1 }
   0x9   :  { %p276_p4 = pnand %p275_p3, %p269_p0 }
   0xb   :  { %279 = shalt.err (!%p276_p4)
}
   0xc   :  { %s327_s15 = smov 64   ;;  %s328_s16 = smov 4  }
   0xd   :  { %22 = dma.hbm_to_vmem [thread:$0]  %s365_s0, 256, %s17_s13, [#allocation3], %s327_s15, %s327_s15, %s328_s16  }
   0xe   :  { %s329_s19 = smov [#allocation5]  }
   0xf   :  { %s28_s20 = sshll.u32 %s329_s19, 4  ;;  %s29_s20 = int_to_ptr.vmem [resolvable:$true] %s28_s20 }
  0x10   :  { %s288_s21 = scalar_lea.vmem %s29_s20, 1024  ;;  %p293_p6 = scmp.lt.s32.totalorder %s29_s20, %s29_s20 }
  0x11   :  { %p289_p5 = scmp.ne.s32.totalorder %s29_s20, %s288_s21  ;;  %p294_p7 = scmp.lt.s32.totalorder %s288_s21, %s288_s21 }
  0x13   :  { %p295_p8 = por %p294_p7, %p293_p6 }
  0x15   :  { %p296_p9 = pnand %p295_p8, %p289_p5 }
  0x17   :  { %299 = shalt.err (!%p296_p9)
}
  0x18   :  { %34 = dma.hbm_to_vmem [thread:$0]  %s366_s1, 1024, %s29_s20, [#allocation6], %s327_s15, %s327_s15, %s328_s16  }
  0x19   :  { %320 = dma.done.wait [#allocation3], 256  }
  0x1a   :  { %321 = vsyncadd [#allocation3], 4294967040 }
  0x1b   :  { %322 = dma.done.wait [#allocation6], 1024  }
  0x1c   :  { %323 = vsyncadd [#allocation6], 4294966272  ;;  %v250_v0 = vld [vmem:[#allocation5 + $0x38] sm:$0xff]   ;;  %v251_v1 = vld [vmem:[#allocation5 + $0x30] sm:$0xff]   ;;  %s330_s24 = smov [#allocation7]  }
  0x1d   :  { %223 = vmatprep.subr.bf16.mxu0 %v250_v0  ;;  %v252_v2 = vld [vmem:[#allocation5 + $0x28] sm:$0xff]   ;;  %v253_v3 = vld [vmem:[#allocation5 + $0x20] sm:$0xff]   ;;  %v258_v4 = vld [vmem:[#allocation2] sm:$0xff]   ;;  %s189_s25 = sshll.u32 %s330_s24, 4  ;;  %s190_s25 = int_to_ptr.vmem [resolvable:$true] %s189_s25 }
  0x1e   :  { %224 = vmatpush3.bf16.msra.mxu0 %v250_v0  ;;  %239 = vmatprep.mubr.bf16.mxu0 %v258_v4  ;;  %v254_v5 = vld [vmem:[#allocation5 + $0x18] sm:$0xff]   ;;  %v255_v6 = vld [vmem:[#allocation5 + $0x10] sm:$0xff]   ;;  %v256_v7 = vld [vmem:[#allocation5 + $0x8] sm:$0xff]   ;;  %s300_s26 = scalar_lea.vmem %s190_s25, 512  ;;  %p305_p11 = scmp.lt.s32.totalorder %s190_s25, %s190_s25 }
  0x1f   :  { %225 = vmatprep.subr.bf16.mxu0 %v251_v1  ;;  %v257_v8 = vld [vmem:[#allocation5] sm:$0xff]   ;;  %v259_v9 = vld [vmem:[#allocation2 + $0x8] sm:$0xff]   ;;  %v202_v10 = vld [vmem:[%s367_s2] ss:$0 sm:$0xff]  ;;  %p301_p10 = scmp.ne.s32.totalorder %s190_s25, %s300_s26  ;;  %p306_p12 = scmp.lt.s32.totalorder %s300_s26, %s300_s26 }
  0x21   :  { %p307_p13 = por %p306_p12, %p305_p11 }
  0x22   :  { %226 = vmatpush3.bf16.msra.mxu0 %v251_v1 }
  0x23   :  { %227 = vmatprep.subr.bf16.mxu0 %v252_v2  ;;  %p308_p0 = pnand %p307_p13, %p301_p10 }
  0x26   :  { %228 = vmatpush3.bf16.msra.mxu0 %v252_v2 }
  0x27   :  { %229 = vmatprep.subr.bf16.mxu0 %v253_v3 }
  0x2a   :  { %230 = vmatpush3.bf16.msra.mxu0 %v253_v3 }
  0x2b   :  { %231 = vmatprep.subr.bf16.mxu0 %v254_v5 }
  0x2e   :  { %232 = vmatpush3.bf16.msra.mxu0 %v254_v5 }
  0x2f   :  { %233 = vmatprep.subr.bf16.mxu0 %v255_v6 }
  0x32   :  { %234 = vmatpush3.bf16.msra.mxu0 %v255_v6 }
  0x33   :  { %235 = vmatprep.subr.bf16.mxu0 %v256_v7 }
  0x36   :  { %236 = vmatpush3.bf16.msra.mxu0 %v256_v7 }
  0x37   :  { %237 = vmatprep.subr.bf16.mxu0 %v257_v8 }
  0x3a   :  { %238 = vmatpush3.bf16.msra.mxu0 %v257_v8 }
  0x3d   :  { %240 = vmatmul.mubr.bf16.vlgmr.msra.gmra.mxu0 %v259_v9 }
  0xfd   :  { %v241_v11 = vpop.f32.mrf.mxu0 }
  0xfe   :  { %v174_v12 = vadd.f32 %v241_v11, %v202_v10 }
  0xff   :  { %v165_v13 = vpop.f32.mrf.mxu0 }
 0x100   :  { %182 = vst [vmem:[#allocation7 + $0x10] sm:$0xff] %v174_v12  ;;  %v166_v14 = vadd.f32 %v202_v10, %v165_v13 }
 0x101   :  { %v242_v15 = vpop.f32.mrf.mxu0 }
 0x102   :  { %180 = vst [vmem:[#allocation7] sm:$0xff] %v166_v14  ;;  %v177_v16 = vadd.f32 %v242_v15, %v202_v10 }
 0x103   :  { %v168_v17 = vpop.f32.mrf.mxu0 }
 0x104   :  { %183 = vst [vmem:[#allocation7 + $0x18] sm:$0xff] %v177_v16  ;;  %v169_v18 = vadd.f32 %v202_v10, %v168_v17 }
 0x106   :  { %181 = vst [vmem:[#allocation7 + $0x8] sm:$0xff] %v169_v18 }
 0x107   :  { %311 = shalt.err (!%p308_p0)
}
 0x108   :  { %s331_s2 = smov 128   ;;  %s332_s27 = smov 8  }
 0x109   :  { %195 = dma.vmem_to_hbm [thread:$0]  %s190_s25, 512, %s368_s3, [#allocation4], %s331_s2, %s331_s2, %s332_s27  }
 0x10a   :  { %324 = dma.done.wait [#allocation4], 512  }
 0x10b   :  { %325 = vsyncadd [#allocation4], 4294966784 }
 0x10c   :  { %199 = vsyncpa [#allocation3], 1 }
 0x10d   :  { %200 = vsyncpa [#allocation6], 1 }
 0x10e   :  { %201 = vsyncpa [#allocation4], 1 }

</bundles_post_ra>
